<compile_context>
chip_gen: v6e
topology: v6e:2x2x1
jax: 0.10.0
libtpu: 0.0.40
codegen_flags: <defaults>
</compile_context>

<pallas_src>
import numpy as np

import jax
import jax.numpy as jnp
from jax.experimental import pallas as pl
from jax.experimental.pallas import tpu as pltpu


def _expert_mlp_kernel(eid_ref, x_ref, w1_ref, w2_ref, o_ref, acc_ref):
    # eid_ref: scalar-prefetched per-block expert ids (used only by index_maps).
    # x_ref  : (TM, d_model)      bf16 token tile (same tile across all hidden steps)
    # w1_ref : (d_model, TH)      bf16 slice of this block's expert W1
    # w2_ref : (TH, d_model)      bf16 slice of this block's expert W2
    # o_ref  : (TM, d_model)      output tile (original dtype)
    # acc_ref: (TM, d_model) f32  accumulator over hidden tiles
    del eid_ref
    t = pl.program_id(1)

    @pl.when(t == 0)
    def _init():
        acc_ref[...] = jnp.zeros_like(acc_ref)

    x = x_ref[...]
    h = jnp.dot(x, w1_ref[...], preferred_element_type=jnp.float32)
    h = jnp.maximum(h, 0.0).astype(w2_ref.dtype)  # ReLU, back to bf16 for the MXU
    acc_ref[...] += jnp.dot(h, w2_ref[...], preferred_element_type=jnp.float32)

    @pl.when(t == pl.num_programs(1) - 1)
    def _flush():
        o_ref[...] = acc_ref[...].astype(o_ref.dtype)


def _vmem_plan_bytes(tm, d_model, th, w_itemsize, x_itemsize, out_itemsize):
    """Rough per-step VMEM footprint of the tiling plan (double-buffered I/O)."""
    weights = 2 * 2 * d_model * th * w_itemsize       # W1 + W2 tiles, double-buffered
    x = 2 * tm * d_model * x_itemsize
    out = 2 * tm * d_model * out_itemsize
    acc = tm * d_model * 4
    h_tmp = tm * th * (4 + w_itemsize)                # f32 intermediate + bf16 copy
    return weights + x + out + acc + h_tmp


def _grouped_mlp_pallas(x_pad, block_eids, w1, w2, *, out_dtype, tm, th):
    """x_pad: [Npad, d_model] (Npad % tm == 0), block_eids: [Npad//tm] int32."""
    n_pad, d_model = x_pad.shape
    n_experts, _, d_hidden = w1.shape
    num_blocks = n_pad // tm
    num_h = d_hidden // th

    if num_h > 1:
        # Snake order over the hidden axis: even blocks t=0..H-1, odd blocks t=H-1..0,
        # so the weight tile at every block boundary matches and Pallas skips its DMA.
        def _t_eff(b, t):
            parity = b % 2
            return t + parity * (num_h - 1 - 2 * t)
    else:
        def _t_eff(b, t):
            return t

    grid_spec = pltpu.PrefetchScalarGridSpec(
        num_scalar_prefetch=1,
        grid=(num_blocks, num_h),
        in_specs=[
            # Token tile: constant across the hidden axis -> fetched once per block.
            pl.BlockSpec((tm, d_model), lambda b, t, eid: (b, 0)),
            # Expert weights: leading expert dim squeezed; hidden dim tiled by TH.
            # With num_h == 1 the returned indices are constant across consecutive
            # same-expert blocks, so the weight DMA is skipped (weights fetched once
            # per contiguous expert run).
            pl.BlockSpec((None, d_model, th),
                         lambda b, t, eid: (eid[b], 0, _t_eff(b, t))),
            pl.BlockSpec((None, th, d_model),
                         lambda b, t, eid: (eid[b], _t_eff(b, t), 0)),
        ],
        out_specs=pl.BlockSpec((tm, d_model), lambda b, t, eid: (b, 0)),
        scratch_shapes=[pltpu.VMEM((tm, d_model), jnp.float32)],
    )

    flops = 4 * n_pad * d_model * d_hidden
    w_bytes_per_expert = 2 * d_model * d_hidden * w1.dtype.itemsize
    n_weight_fetches = min(num_blocks, n_experts) if num_h == 1 else num_blocks
    bytes_accessed = (
        x_pad.size * x_pad.dtype.itemsize
        + n_pad * d_model * np.dtype(out_dtype).itemsize
        + n_weight_fetches * w_bytes_per_expert
    )

    est = _vmem_plan_bytes(tm, d_model, th, w1.dtype.itemsize,
                           x_pad.dtype.itemsize, np.dtype(out_dtype).itemsize)
    vmem_limit = int(min(max(est + (12 << 20), 32 << 20), 96 << 20))

    return pl.pallas_call(
        _expert_mlp_kernel,
        out_shape=jax.ShapeDtypeStruct((n_pad, d_model), out_dtype),
        grid_spec=grid_spec,
        compiler_params=pltpu.CompilerParams(
            dimension_semantics=("parallel", "arbitrary"),
            vmem_limit_bytes=vmem_limit,
        ),
        cost_estimate=pl.CostEstimate(
            flops=flops, transcendentals=0, bytes_accessed=int(bytes_accessed)),
    )(block_eids, x_pad, w1, w2)


class SeqExpertsPallas:
    """JAX/Pallas equivalent of pipemoe.experts.SeqExperts forward pass."""

    def __init__(self, num_local_experts, d_model=1024, d_hidden=4096, *,
                 key=None, block_tokens=256, hidden_tile=None,
                 compute_dtype=jnp.bfloat16, vmem_budget_bytes=44 << 20):
        self.num_local_experts = num_local_experts
        self.d_model = d_model
        self.d_hidden = d_hidden
        self.compute_dtype = compute_dtype

        # Token tile: >=128 rows keeps the MXU fed; must be a sublane multiple.
        tm = max(8, (int(block_tokens) // 8) * 8)
        self.tm = tm

        w_itemsize = np.dtype(compute_dtype).itemsize
        if hidden_tile is not None:
            # Explicit tile: must divide d_hidden and be lane-aligned (or full dim).
            th = min(int(hidden_tile), d_hidden)
            if d_hidden % th != 0 or (th != d_hidden and th % 128 != 0):
                th = d_hidden
        else:
            # Auto: pick the largest valid TH whose tiling plan fits the VMEM budget;
            # TH == d_hidden enables full weight reuse across same-expert blocks.
            cands = {d_hidden}
            c = 128
            while c < d_hidden:
                if d_hidden % c == 0:
                    cands.add(c)
                c += 128
            cands = sorted(cands, reverse=True)
            th = cands[-1]
            for cand in cands:
                if _vmem_plan_bytes(tm, d_model, cand, w_itemsize,
                                    w_itemsize, 4) <= vmem_budget_bytes:
                    th = cand
                    break
        self.th = th

        if key is None:
            key = jax.random.PRNGKey(0)
        k1, k2 = jax.random.split(key)
        lim1 = 1.0 / np.sqrt(d_model)
        lim2 = 1.0 / np.sqrt(d_hidden)
        # w1[e]: (d_model, d_hidden) so that x @ w1[e] == Linear(d_model, d_hidden)(x)
        self.w1 = jax.random.uniform(
            k1, (num_local_experts, d_model, d_hidden), jnp.float32, -lim1, lim1
        ).astype(compute_dtype)
        self.w2 = jax.random.uniform(
            k2, (num_local_experts, d_hidden, d_model), jnp.float32, -lim2, lim2
        ).astype(compute_dtype)

    def __call__(self, inputs, splits):
        """inputs: [N, d_model]; splits: host sequence of python ints summing to N."""
        splits = [int(s) for s in splits]
        n = int(sum(splits))
        d_model = self.d_model
        if n == 0:
            return jnp.zeros((0, d_model), inputs.dtype)

        tm = self.tm
        e_count = self.num_local_experts

        # Group rows by expert (chunk i -> expert i % E), preserving order per expert.
        expert_rows = [[] for _ in range(e_count)]
        row = 0
        for i, s in enumerate(splits):
            expert_rows[i % e_count].extend(range(row, row + s))
            row += s

        gather_idx = []                           # padded row -> source row (n = zero pad)
        inv_pos = np.zeros(n, dtype=np.int32)     # original row -> padded row
        block_eids = []
        for e, rows in enumerate(expert_rows):
            if not rows:
                continue
            start = len(gather_idx)
            for j, r in enumerate(rows):
                inv_pos[r] = start + j
            gather_idx.extend(rows)
            pad = (-len(rows)) % tm               # per-expert padding (<= tm-1 rows)
            gather_idx.extend([n] * pad)
            block_eids.extend([e] * ((len(rows) + pad) // tm))

        gather_idx = jnp.asarray(np.asarray(gather_idx, np.int32))
        block_eids = jnp.asarray(np.asarray(block_eids, np.int32))
        inv_pos = jnp.asarray(inv_pos)

        # One fused gather builds the expert-sorted, per-expert-padded layout.
        x_ext = jnp.concatenate(
            [inputs, jnp.zeros((1, d_model), inputs.dtype)], axis=0)
        x_pad = jnp.take(x_ext, gather_idx, axis=0).astype(self.compute_dtype)

        out_pad = _grouped_mlp_pallas(
            x_pad, block_eids, self.w1, self.w2,
            out_dtype=inputs.dtype, tm=tm, th=self.th)

        # Single gather restores original token order and strips padding rows.
        return jnp.take(out_pad, inv_pos, axis=0)


def _reference(inputs, splits, w1, w2, num_experts):
    """Pure-JAX reference mirroring the PyTorch forward (f32 math, bf16 weights)."""
    w1 = w1.astype(jnp.float32)
    w2 = w2.astype(jnp.float32)
    outs = []
    off = 0
    for i, s in enumerate(splits):
        chunk = inputs[off:off + s]
        e = i % num_experts
        h = jnp.maximum(chunk @ w1[e], 0.0)
        outs.append(h @ w2[e])
        off += s
    return jnp.concatenate(outs, axis=0)


if __name__ == "__main__":
    key = jax.random.PRNGKey(0)

    # Case 1: full-hidden-residency path (TH == d_hidden, weight DMA reused across
    #         consecutive same-expert token blocks).
    num_local_experts = 2
    d_model, d_hidden = 32, 64
    splits = [3, 5, 6, 2]                       # 4 chunks -> experts 0,1,0,1
    k_in, k_w, key = jax.random.split(key, 3)
    inputs = jax.random.normal(k_in, (sum(splits), d_model), jnp.float32)
    model = SeqExpertsPallas(num_local_experts, d_model, d_hidden,
                             key=k_w, block_tokens=128)
    out = jax.block_until_ready(model(inputs, splits))
    ref = _reference(inputs, splits, model.w1, model.w2, num_local_experts)
    np.testing.assert_allclose(np.asarray(out), np.asarray(ref),
                               rtol=2e-2, atol=2e-2)

    # Case 2: tiled-hidden path with snake traversal (TH < d_hidden).
    num_local_experts = 3
    d_model, d_hidden = 32, 256
    splits = [4, 7, 9, 5, 2, 3]                 # 6 chunks -> experts 0,1,2,0,1,2
    k_in, k_w, key = jax.random.split(key, 3)
    inputs = jax.random.normal(k_in, (sum(splits), d_model), jnp.float32)
    model = SeqExpertsPallas(num_local_experts, d_model, d_hidden,
                             key=k_w, block_tokens=128, hidden_tile=128)
    out = jax.block_until_ready(model(inputs, splits))
    ref = _reference(inputs, splits, model.w1, model.w2, num_local_experts)
    np.testing.assert_allclose(np.asarray(out), np.asarray(ref),
                               rtol=3e-2, atol=3e-2)

    print("KERNEL_OK")
</pallas_src>

<mosaic_0001>
module attributes {stable_mosaic.version = 11 : i64} {
  func.func @_expert_mlp_kernel(%arg0: i32, %arg1: i32, %arg2: memref<2xi32, #tpu.memory_space<smem>>, %arg3: memref<128x32xbf16, #tpu.memory_space<vmem>>, %arg4: memref<1x32x64xbf16, #tpu.memory_space<vmem>>, %arg5: memref<1x64x32xbf16, #tpu.memory_space<vmem>>, %arg6: memref<128x32xf32, #tpu.memory_space<vmem>>, %arg7: memref<128x32xf32, #tpu.memory_space<vmem>>) attributes {dimension_semantics = [#tpu.dimension_semantics<parallel>, #tpu.dimension_semantics<arbitrary>], iteration_bounds = array<i64: 2, 1>, scalar_prefetch = 1 : i64, scratch_operands = 1 : i64, tpu.core_type = #tpu.core_type<tc>, window_params = [{transform_indices = @transform_0, window_bounds = array<i64: 128, 32>}, {transform_indices = @transform_1, window_bounds = array<i64: 1, 32, 64>}, {transform_indices = @transform_2, window_bounds = array<i64: 1, 64, 32>}, {transform_indices = @transform_3, window_bounds = array<i64: 128, 32>}]} {
    %c0_i32 = arith.constant 0 : i32
    %0 = arith.cmpi eq, %arg1, %c0_i32 : i32
    %1 = arith.extui %0 : i1 to i32
    %c0_i32_0 = arith.constant 0 : i32
    %2 = arith.cmpi ne, %1, %c0_i32_0 : i32
    scf.if %2 {
      %cst_16 = arith.constant 0.000000e+00 : f32
      %19 = vector.broadcast %cst_16 : f32 to vector<128x32xf32>
      %c0_17 = arith.constant 0 : index
      %c0_18 = arith.constant 0 : index
      %20 = vector.load %arg7[%c0_17, %c0_18] : memref<128x32xf32, #tpu.memory_space<vmem>>, vector<128x32xf32>
      tpu.vector_store %arg7[%c0_17, %c0_18], %19 {strides = array<i32>} : memref<128x32xf32, #tpu.memory_space<vmem>>, vector<128x32xf32>,
    } else {
    }
    %c0 = arith.constant 0 : index
    %c0_1 = arith.constant 0 : index
    %3 = vector.load %arg3[%c0, %c0_1] : memref<128x32xbf16, #tpu.memory_space<vmem>>, vector<128x32xbf16>
    %c0_2 = arith.constant 0 : index
    %c0_3 = arith.constant 0 : index
    %c0_4 = arith.constant 0 : index
    %4 = vector.load %arg4[%c0_2, %c0_3, %c0_4] : memref<1x32x64xbf16, #tpu.memory_space<vmem>>, vector<1x32x64xbf16>
    %5 = vector.shape_cast %4 : vector<1x32x64xbf16> to vector<32x64xbf16>
    %cst = arith.constant dense<0.000000e+00> : vector<128x64xf32>
    %6 = tpu.matmul %3, %5, %cst {dimension_numbers = #tpu.dot_dimension_numbers<[1], [0], [0], [1], [0, 0, 1, 1], [], []>} : vector<128x32xbf16>, vector<32x64xbf16>, vector<128x64xf32> -> vector<128x64xf32>
    %cst_5 = arith.constant 0.000000e+00 : f32
    %7 = vector.broadcast %cst_5 : f32 to vector<128x64xf32>
    %8 = arith.maximumf %6, %7 : vector<128x64xf32>
    %9 = arith.truncf %8 : vector<128x64xf32> to vector<128x64xbf16>
    %c0_6 = arith.constant 0 : index
    %c0_7 = arith.constant 0 : index
    %10 = vector.load %arg7[%c0_6, %c0_7] : memref<128x32xf32, #tpu.memory_space<vmem>>, vector<128x32xf32>
    %c0_8 = arith.constant 0 : index
    %c0_9 = arith.constant 0 : index
    %c0_10 = arith.constant 0 : index
    %11 = vector.load %arg5[%c0_8, %c0_9, %c0_10] : memref<1x64x32xbf16, #tpu.memory_space<vmem>>, vector<1x64x32xbf16>
    %12 = vector.shape_cast %11 : vector<1x64x32xbf16> to vector<64x32xbf16>
    %cst_11 = arith.constant dense<0.000000e+00> : vector<128x32xf32>
    %13 = tpu.matmul %9, %12, %cst_11 {dimension_numbers = #tpu.dot_dimension_numbers<[1], [0], [0], [1], [0, 0, 1, 1], [], []>} : vector<128x64xbf16>, vector<64x32xbf16>, vector<128x32xf32> -> vector<128x32xf32>
    %14 = arith.addf %10, %13 : vector<128x32xf32>
    %c0_12 = arith.constant 0 : index
    %c0_13 = arith.constant 0 : index
    %15 = vector.load %arg7[%c0_12, %c0_13] : memref<128x32xf32, #tpu.memory_space<vmem>>, vector<128x32xf32>
    tpu.vector_store %arg7[%c0_12, %c0_13], %14 {strides = array<i32>} : memref<128x32xf32, #tpu.memory_space<vmem>>, vector<128x32xf32>,
    %c0_i32_14 = arith.constant 0 : i32
    %16 = arith.cmpi eq, %arg1, %c0_i32_14 : i32
    %17 = arith.extui %16 : i1 to i32
    %c0_i32_15 = arith.constant 0 : i32
    %18 = arith.cmpi ne, %17, %c0_i32_15 : i32
    scf.if %18 {
      %c0_16 = arith.constant 0 : index
      %c0_17 = arith.constant 0 : index
      %19 = vector.load %arg7[%c0_16, %c0_17] : memref<128x32xf32, #tpu.memory_space<vmem>>, vector<128x32xf32>
      %c0_18 = arith.constant 0 : index
      %c0_19 = arith.constant 0 : index
      %20 = vector.load %arg6[%c0_18, %c0_19] : memref<128x32xf32, #tpu.memory_space<vmem>>, vector<128x32xf32>
      tpu.vector_store %arg6[%c0_18, %c0_19], %19 {strides = array<i32>} : memref<128x32xf32, #tpu.memory_space<vmem>>, vector<128x32xf32>,
    } else {
    }
    return
  }
  func.func @transform_0(%arg0: i32, %arg1: i32, %arg2: memref<2xi32, #tpu.memory_space<smem>>) -> (i32, i32) {
    %c0_i32 = arith.constant 0 : i32
    %c0_i32_0 = arith.constant 0 : i32
    return %arg0, %c0_i32 : i32, i32
  }
  func.func @transform_1(%arg0: i32, %arg1: i32, %arg2: memref<2xi32, #tpu.memory_space<smem>>) -> (i32, i32, i32) {
    %0 = arith.index_cast %arg0 : i32 to index
    %1 = memref.load %arg2[%0] : memref<2xi32, #tpu.memory_space<smem>>
    %c0_i32 = arith.constant 0 : i32
    %c0_i32_0 = arith.constant 0 : i32
    return %1, %c0_i32, %arg1 : i32, i32, i32
  }
  func.func @transform_2(%arg0: i32, %arg1: i32, %arg2: memref<2xi32, #tpu.memory_space<smem>>) -> (i32, i32, i32) {
    %0 = arith.index_cast %arg0 : i32 to index
    %1 = memref.load %arg2[%0] : memref<2xi32, #tpu.memory_space<smem>>
    %c0_i32 = arith.constant 0 : i32
    %c0_i32_0 = arith.constant 0 : i32
    return %1, %arg1, %c0_i32 : i32, i32, i32
  }
  func.func @transform_3(%arg0: i32, %arg1: i32, %arg2: memref<2xi32, #tpu.memory_space<smem>>) -> (i32, i32) {
    %c0_i32 = arith.constant 0 : i32
    %c0_i32_0 = arith.constant 0 : i32
    return %arg0, %c0_i32 : i32, i32
  }
}

</mosaic_0001>

<bundles_post_ra>
// kernel: tpu_custom_call.1
= control target key start
LH: loop header
LB: loop body
LE: loop exit
PB: predicated region body
PF: predicated region fallthrough
CT: control target
= control target key end

     0   :  { %s1208_s0 = inlined_call_operand.vmem [shape: s32[2], index: 0, kind: input, shape index: {}]   ;;  %s1209_s1 = inlined_call_operand.vmem [shape: bf16[256,32], index: 1, kind: input, shape index: {}]   ;;  %s1210_s2 = inlined_call_operand.vmem [shape: bf16[2,32,64], index: 2, kind: input, shape index: {}]   ;;  %s1211_s3 = inlined_call_operand.vmem [shape: bf16[2,64,32], index: 3, kind: input, shape index: {}]   ;;  %s1212_s4 = inlined_call_operand.vmem [shape: f32[256,32], index: 4, kind: output, shape index: {}]  }
   0x1   :  { %s9_s17 = sshll.u32 %s1208_s0, 4  ;;  %s10_s17 = int_to_ptr.vmem [resolvable:$true] %s9_s17 }
   0x2   :  { %s1005_s18 = scalar_lea.vmem %s10_s17, 16  ;;  %p1010_p1 = scmp.lt.s32.totalorder %s10_s17, %s10_s17 }
   0x3   :  { %p1006_p0 = scmp.ne.s32.totalorder %s10_s17, %s1005_s18  ;;  %p1011_p2 = scmp.lt.s32.totalorder %s1005_s18, %s1005_s18 }
   0x5   :  { %p1012_p3 = por %p1011_p2, %p1010_p1 }
   0x7   :  { %p1013_p4 = pnand %p1012_p3, %p1006_p0 }
   0x9   :  { %1016 = shalt.err (!%p1013_p4)  }
   0xa   :  { %s1043_s19 = smov [#allocation4]  }
   0xb   :  { %12 = dma.vmem_to_smem %s10_s17, 16, %s1043_s19, [#allocation3] }
   0xc   :  { %1029 = dma.done.wait [#allocation3], 16 }
   0xd   :  { %1030 = vsyncadd [#allocation3], 4294967280 }
   0xe   :  { %14 = sfence }
   0xf   :  { %s1073_s20 = smov 0   ;;  %s1075_s21 = smov 0  }
  0x10   :  { %s1077_s22 = smov 0  }
  0x11 LB: > { %s32_s0 = sadd.s32 1, %s1037_s21  ;;  %p856_p5 = scmp.ge.s32.totalorder %s1041_s22, 1  ;;  %s1041_s22 = sphi %s1077_s22, %s20_s22   ;;  %s1037_s21 = sphi %s1075_s21, %s1214_s21   ;;  %s1033_s20 = sphi %s1073_s20, %s1213_s20  }
  0x12   : > { %p34_p6 = scmp.ge.s32.totalorder %s32_s0, 2  ;;  %p197_p7 = scmp.lt.s32.totalorder %s1041_s22, 3 }
  0x14   : > { %s1216_s0 = smov (%p34_p6, %s32_s0), 0  ;;  %p198_p8 = pnand %p856_p5, %p197_p7 }
  0x15   : > { %s246_s23 = sld [smem:[#allocation4 + %s1033_s20]] (!%p198_p8)  ;;  %s857_s24 = sshll.u32 (!%p198_p8), %s1033_s20, 4 }
  0x16   : > { %201 = sbr.rel (%p198_p8) target bundleno = 480 (0x1e0), region = 32  ;;  %p241_p9 = scmp.lt.s32.totalorder (!%p198_p8), %s857_s24, 31 }
  0x17   : > { %s256_s25 = sld [smem:[#allocation4 + %s1033_s20]] (!%p198_p8) }
  0x1b   : > { %s1218_s24 = smov (!%p241_p9, %s857_s24), 31  ;;  %p247_p10 = scmp.lt.s32.totalorder %s246_s23, 1  ;;  %vm279_vm0 = vcmask 261120   ;;  %v1044_v14 = vmov 0.0   ;;  %vm562_vm1 = vcmask 523264  }
  0x1c   : > { %s858_s26 = sshll.u32 %s1218_s24, 2  ;;  %282 = vst.msk [vmem:[#allocation2 + $0x10] sm:$0xff] %vm279_vm0, %v1044_v14  ;;  %280 = vst.msk [vmem:[#allocation2] sm:$0xff] %vm279_vm0, %v1044_v14  ;;  %s864_s12 = sshll.u32 %s1218_s24, 3 }
  0x1d   : > { %s1097_s29 = scalar_lea.vmem %s1209_s1, %s858_s26  ;;  %p258_p11 = scmp.lt.s32.totalorder %s256_s25, 1  ;;  %281 = vst.msk [vmem:[#allocation2 + $0x8] sm:$0xff] %vm279_vm0, %v1044_v14  ;;  %283 = vst.msk [vmem:[#allocation2 + $0x18] sm:$0xff] %vm279_vm0, %v1044_v14 }
  0x1e   : > { %v993_v0 = vld [vmem:[%s1097_s29] sm:$0xff]   ;;  %s1220_s23 = smov (!%p247_p10, %s246_s23), 1  ;;  %v994_v3 = vld [vmem:[%s1097_s29 + $0x8] sm:$0xff]   ;;  %v995_v4 = vld [vmem:[%s1097_s29 + $0x10] sm:$0xff]   ;;  %284 = vst.msk [vmem:[#allocation2 + $0x20] sm:$0xff] %vm279_vm0, %v1044_v14  ;;  %s1152_s15 = scalar_lea.vmem %s1212_s4, %s864_s12 }
  0x1f   : > { %925 = vmatprep.mubr.msk.bf16.mxu0 %vm279_vm0, %v993_v0  ;;  %s1222_s25 = smov (!%p258_p11, %s256_s25), 1  ;;  %s897_s30 = sshll.u32 %s1220_s23, 4  ;;  %v996_v6 = vld [vmem:[%s1097_s29 + $0x18] sm:$0xff]   ;;  %v997_v7 = vld [vmem:[%s1097_s29 + $0x20] sm:$0xff]   ;;  %v998_v8 = vld [vmem:[%s1097_s29 + $0x28] sm:$0xff]   ;;  %285 = vst.msk [vmem:[#allocation2 + $0x28] sm:$0xff] %vm279_vm0, %v1044_v14 }
  0x20   : > { %s254_s7 = scalar_lea.vmem %s1210_s2, %s897_s30  ;;  %s898_s8 = sshll.u32 %s1222_s25, 5  ;;  %v999_v9 = vld [vmem:[%s1097_s29 + $0x30] sm:$0xff]   ;;  %v1000_v10 = vld [vmem:[%s1097_s29 + $0x38] sm:$0xff]   ;;  %286 = vst.msk [vmem:[#allocation2 + $0x30] sm:$0xff] %vm279_vm0, %v1044_v14  ;;  %287 = vst.msk [vmem:[#allocation2 + $0x38] sm:$0xff] %vm279_vm0, %v1044_v14 }
  0x21   : > { %v991_v1 = vld [vmem:[%s254_s7 + $0x8] sm:$0xff]   ;;  %v992_v2 = vld [vmem:[%s254_s7] sm:$0xff]   ;;  %s265_s11 = scalar_lea.vmem %s1211_s3, %s898_s8  ;;  %288 = vst.msk [vmem:[#allocation2 + $0x40] sm:$0xff] %vm279_vm0, %v1044_v14  ;;  %289 = vst.msk [vmem:[#allocation2 + $0x48] sm:$0xff] %vm279_vm0, %v1044_v14 }
  0x22   : > { %921 = vmatprep.subr.bf16.mxu0 %v991_v1  ;;  %v1001_v5 = vld [vmem:[%s265_s11 + $0x18] sm:$0xff]   ;;  %v1002_v11 = vld [vmem:[%s265_s11 + $0x10] sm:$0xff]   ;;  %v1003_v12 = vld [vmem:[%s265_s11 + $0x8] sm:$0xff]   ;;  %290 = vst.msk [vmem:[#allocation2 + $0x50] sm:$0xff] %vm279_vm0, %v1044_v14 }
  0x23   : > { %922 = vmatpush3.bf16.msra.mxu0 %v991_v1  ;;  %941 = vmatprep.subr.bf16.mxu1 %v1001_v5  ;;  %v1004_v13 = vld [vmem:[%s265_s11] sm:$0xff]   ;;  %291 = vst.msk [vmem:[#allocation2 + $0x58] sm:$0xff] %vm279_vm0, %v1044_v14  ;;  %292 = vst.msk [vmem:[#allocation2 + $0x60] sm:$0xff] %vm279_vm0, %v1044_v14  ;;  %v516_v55 = vld [vmem:[#allocation2 + $0x10] sm:$0xff] }
  0x24   : > { %923 = vmatprep.subr.bf16.mxu0 %v992_v2  ;;  %942 = vmatpush3.bf16.msra.mxu1 %v1001_v5  ;;  %293 = vst.msk [vmem:[#allocation2 + $0x68] sm:$0xff] %vm279_vm0, %v1044_v14  ;;  %294 = vst.msk [vmem:[#allocation2 + $0x70] sm:$0xff] %vm279_vm0, %v1044_v14  ;;  %v514_v57 = vld [vmem:[#allocation2] sm:$0xff]  ;;  %v517_v60 = vld [vmem:[#allocation2 + $0x18] sm:$0xff] }
  0x25   : > { %943 = vmatprep.subr.bf16.mxu1 %v1002_v11  ;;  %295 = vst.msk [vmem:[#allocation2 + $0x78] sm:$0xff] %vm279_vm0, %v1044_v14  ;;  %v515_v63 = vld [vmem:[#allocation2 + $0x8] sm:$0xff]  ;;  %v518_v5 = vld [vmem:[#allocation2 + $0x20] sm:$0xff] }
  0x27   : > { %924 = vmatpush3.bf16.msra.mxu0 %v992_v2  ;;  %v520_v2 = vld [vmem:[#allocation2 + $0x30] sm:$0xff] }
  0x28   : > { %944 = vmatpush3.bf16.msra.mxu1 %v1002_v11 }
  0x29   : > { %945 = vmatprep.subr.bf16.mxu1 %v1003_v12 }
  0x2a   : > { %926 = vmatmul.mubr.msk.bf16.vlgmr.msra.gmra.mxu0 %vm279_vm0, %v994_v3 }
  0x2b   : > { %929 = vmatprep.mubr.msk.bf16.mxu0 %vm279_vm0, %v995_v4 }
  0x2c   : > { %946 = vmatpush3.bf16.msra.mxu1 %v1003_v12 }
  0x2d   : > { %947 = vmatprep.subr.bf16.mxu1 %v1004_v13 }
  0x30   : > { %948 = vmatpush3.bf16.msra.mxu1 %v1004_v13  ;;  %v519_v13 = vld [vmem:[#allocation2 + $0x28] sm:$0xff] }
  0x32   : > { %930 = vmatmul.mubr.msk.bf16.gmra.mxu0 %vm279_vm0, %v996_v6 }
  0x33   : > { %933 = vmatprep.mubr.msk.bf16.mxu0 %vm279_vm0, %v997_v7 }
  0x3a   : > { %934 = vmatmul.mubr.msk.bf16.gmra.mxu0 %vm279_vm0, %v998_v8 }
  0x3b   : > { %937 = vmatprep.mubr.msk.bf16.mxu0 %vm279_vm0, %v999_v9  ;;  %v521_v9 = vld [vmem:[#allocation2 + $0x38] sm:$0xff] }
  0x42   : > { %938 = vmatmul.mubr.msk.bf16.gmra.mxu0 %vm279_vm0, %v1000_v10 }
  0xea   : > { %v927_v15 = vpop.f32.mrf.mxu0 }
  0xeb   : > { %v492_v22 = vmax.f32 %v927_v15, 0.0 }
  0xec   : > { %v427_v16 = vpop.f32.mrf.mxu0 }
  0xed   : > { %v490_v20 = vmax.f32 %v427_v16, 0.0 }
  0xee   : > { %v928_v17 = vpop.f32.mrf.mxu0 }
  0xef   : > { %v493_v18 = vmax.f32 %v928_v17, 0.0  ;;  %v524_v17 = vld [vmem:[#allocation2 + $0x50] sm:$0xff] }
  0xf0   : > { %v430_v19 = vpop.f32.mrf.mxu0 }
  0xf1   : > { %v491_v21 = vmax.f32 %v430_v19, 0.0  ;;  %v507_v25 = vpack.c.bf16 %v493_v18, %v492_v22 }
  0xf2   : > { %v931_v23 = vpop.f32.mrf.mxu0 }
  0xf3   : > { %v506_v24 = vpack.c.bf16 %v491_v21, %v490_v20  ;;  %v496_v32 = vmax.f32 %v931_v23, 0.0  ;;  %v522_v21 = vld [vmem:[#allocation2 + $0x40] sm:$0xff] }
  0xf4   : > { %v443_v26 = vpop.f32.mrf.mxu0 }
  0xf5   : > { %949 = vmatprep.mubr.msk.bf16.mxu1 %vm562_vm1, %v506_v24  ;;  %v494_v30 = vmax.f32 %v443_v26, 0.0 }
  0xf6   : > { %v932_v27 = vpop.f32.mrf.mxu0  ;;  %950 = vmatmul.mubr.msk.bf16.vlgmr.msra.gmra.mxu1 %vm562_vm1, %v507_v25  ;;  %v525_v25 = vld [vmem:[#allocation2 + $0x58] sm:$0xff] }
  0xf7   : > { %v497_v28 = vmax.f32 %v932_v27, 0.0 }
  0xf8   : > { %v446_v29 = vpop.f32.mrf.mxu0 }
  0xf9   : > { %v495_v31 = vmax.f32 %v446_v29, 0.0  ;;  %v509_v35 = vpack.c.bf16 %v497_v28, %v496_v32  ;;  %v523_v29 = vld [vmem:[#allocation2 + $0x48] sm:$0xff] }
  0xfa   : > { %v935_v33 = vpop.f32.mrf.mxu0 }
  0xfb   : > { %v508_v34 = vpack.c.bf16 %v495_v31, %v494_v30  ;;  %v500_v42 = vmax.f32 %v935_v33, 0.0  ;;  %v528_v33 = vld [vmem:[#allocation2 + $0x70] sm:$0xff] }
  0xfc   : > { %v459_v36 = vpop.f32.mrf.mxu0 }
  0xfd   : > { %953 = vmatprep.mubr.msk.bf16.mxu1 %vm562_vm1, %v508_v34  ;;  %v498_v40 = vmax.f32 %v459_v36, 0.0 }
  0xfe   : > { %v936_v37 = vpop.f32.mrf.mxu0  ;;  %954 = vmatmul.mubr.msk.bf16.gmra.mxu1 %vm562_vm1, %v509_v35 }
  0xff   : > { %v501_v38 = vmax.f32 %v936_v37, 0.0  ;;  %v526_v37 = vld [vmem:[#allocation2 + $0x60] sm:$0xff] }
 0x100   : > { %v462_v39 = vpop.f32.mrf.mxu0 }
 0x101   : > { %v499_v41 = vmax.f32 %v462_v39, 0.0  ;;  %v511_v45 = vpack.c.bf16 %v501_v38, %v500_v42 }
 0x102   : > { %v939_v43 = vpop.f32.mrf.mxu0 }
 0x103   : > { %v510_v44 = vpack.c.bf16 %v499_v41, %v498_v40  ;;  %v504_v52 = vmax.f32 %v939_v43, 0.0  ;;  %v529_v41 = vld [vmem:[#allocation2 + $0x78] sm:$0xff] }
 0x104   : > { %v475_v46 = vpop.f32.mrf.mxu0 }
 0x105   : > { %957 = vmatprep.mubr.msk.bf16.mxu1 %vm562_vm1, %v510_v44  ;;  %v502_v50 = vmax.f32 %v475_v46, 0.0 }
 0x106   : > { %v940_v47 = vpop.f32.mrf.mxu0  ;;  %958 = vmatmul.mubr.msk.bf16.gmra.mxu1 %vm562_vm1, %v511_v45  ;;  %v527_v45 = vld [vmem:[#allocation2 + $0x68] sm:$0xff] }
 0x107   : > { %v505_v48 = vmax.f32 %v940_v47, 0.0 }
 0x108   : > { %v478_v49 = vpop.f32.mrf.mxu0 }
 0x109   : > { %v503_v51 = vmax.f32 %v478_v49, 0.0  ;;  %v513_v54 = vpack.c.bf16 %v505_v48, %v504_v52 }
 0x10b   : > { %v512_v53 = vpack.c.bf16 %v503_v51, %v502_v50 }
 0x10d   : > { %961 = vmatprep.mubr.msk.bf16.mxu1 %vm562_vm1, %v512_v53 }
 0x10e   : > { %962 = vmatmul.mubr.msk.bf16.gmra.mxu1 %vm562_vm1, %v513_v54 }
 0x1b6   : > { %v951_v56 = vpop.f32.mrf.mxu1 }
 0x1b7   : > { %v686_v58 = vadd.f32 %v951_v56, %v516_v55 }
 0x1b8   : > { %v621_v59 = vpop.f32.mrf.mxu1 }
 0x1b9   : > { %702 = vst.msk [vmem:[#allocation2 + $0x10] sm:$0xff] %vm279_vm0, %v686_v58  ;;  %v684_v61 = vadd.f32 %v621_v59, %v514_v57 }
 0x1ba   : > { %v952_v62 = vpop.f32.mrf.mxu1 }
 0x1bb   : > { %700 = vst.msk [vmem:[#allocation2] sm:$0xff] %vm279_vm0, %v684_v61  ;;  %v687_v0 = vadd.f32 %v952_v62, %v517_v60 }
 0x1bc   : > { %v624_v1 = vpop.f32.mrf.mxu1 }
 0x1bd   : > { %703 = vst.msk [vmem:[#allocation2 + $0x18] sm:$0xff] %vm279_vm0, %v687_v0  ;;  %v685_v3 = vadd.f32 %v624_v1, %v515_v63 }
 0x1be   : > { %v955_v4 = vpop.f32.mrf.mxu1 }
 0x1bf   : > { %701 = vst.msk [vmem:[#allocation2 + $0x8] sm:$0xff] %vm279_vm0, %v685_v3  ;;  %v690_v6 = vadd.f32 %v955_v4, %v520_v2 }
 0x1c0   : > { %v721_v7 = vld [vmem:[#allocation2 + $0x10] sm:$0xff]  ;;  %v637_v8 = vpop.f32.mrf.mxu1 }
 0x1c1   : > { %737 = vst.msk [vmem:[%s1152_s15 + $0x10] sm:$0xff] %vm279_vm0, %v721_v7  ;;  %706 = vst.msk [vmem:[#allocation2 + $0x30] sm:$0xff] %vm279_vm0, %v690_v6  ;;  %v688_v10 = vadd.f32 %v637_v8, %v518_v5 }
 0x1c2   : > { %v719_v11 = vld [vmem:[#allocation2] sm:$0xff]  ;;  %v956_v12 = vpop.f32.mrf.mxu1 }
 0x1c3   : > { %735 = vst.msk [vmem:[%s1152_s15] sm:$0xff] %vm279_vm0, %v719_v11  ;;  %704 = vst.msk [vmem:[#allocation2 + $0x20] sm:$0xff] %vm279_vm0, %v688_v10  ;;  %v691_v14 = vadd.f32 %v956_v12, %v521_v9 }
 0x1c4   : > { %v722_v15 = vld [vmem:[#allocation2 + $0x18] sm:$0xff]  ;;  %v640_v16 = vpop.f32.mrf.mxu1 }
 0x1c5   : > { %738 = vst.msk [vmem:[%s1152_s15 + $0x18] sm:$0xff] %vm279_vm0, %v722_v15  ;;  %707 = vst.msk [vmem:[#allocation2 + $0x38] sm:$0xff] %vm279_vm0, %v691_v14  ;;  %v689_v18 = vadd.f32 %v640_v16, %v519_v13 }
 0x1c6   : > { %v720_v19 = vld [vmem:[#allocation2 + $0x8] sm:$0xff]  ;;  %v959_v20 = vpop.f32.mrf.mxu1 }
 0x1c7   : > { %736 = vst.msk [vmem:[%s1152_s15 + $0x8] sm:$0xff] %vm279_vm0, %v720_v19  ;;  %705 = vst.msk [vmem:[#allocation2 + $0x28] sm:$0xff] %vm279_vm0, %v689_v18  ;;  %v694_v22 = vadd.f32 %v959_v20, %v524_v17 }
 0x1c8   : > { %v725_v23 = vld [vmem:[#allocation2 + $0x30] sm:$0xff]  ;;  %v653_v24 = vpop.f32.mrf.mxu1 }
 0x1c9   : > { %741 = vst.msk [vmem:[%s1152_s15 + $0x30] sm:$0xff] %vm279_vm0, %v725_v23  ;;  %710 = vst.msk [vmem:[#allocation2 + $0x50] sm:$0xff] %vm279_vm0, %v694_v22  ;;  %v692_v26 = vadd.f32 %v653_v24, %v522_v21 }
 0x1ca   : > { %v723_v27 = vld [vmem:[#allocation2 + $0x20] sm:$0xff]  ;;  %v960_v28 = vpop.f32.mrf.mxu1 }
 0x1cb   : > { %739 = vst.msk [vmem:[%s1152_s15 + $0x20] sm:$0xff] %vm279_vm0, %v723_v27  ;;  %708 = vst.msk [vmem:[#allocation2 + $0x40] sm:$0xff] %vm279_vm0, %v692_v26  ;;  %v695_v30 = vadd.f32 %v960_v28, %v525_v25 }
 0x1cc   : > { %v726_v31 = vld [vmem:[#allocation2 + $0x38] sm:$0xff]  ;;  %v656_v32 = vpop.f32.mrf.mxu1 }
 0x1cd   : > { %742 = vst.msk [vmem:[%s1152_s15 + $0x38] sm:$0xff] %vm279_vm0, %v726_v31  ;;  %711 = vst.msk [vmem:[#allocation2 + $0x58] sm:$0xff] %vm279_vm0, %v695_v30  ;;  %v693_v34 = vadd.f32 %v656_v32, %v523_v29 }
 0x1ce   : > { %v724_v35 = vld [vmem:[#allocation2 + $0x28] sm:$0xff]  ;;  %v963_v36 = vpop.f32.mrf.mxu1 }
 0x1cf   : > { %740 = vst.msk [vmem:[%s1152_s15 + $0x28] sm:$0xff] %vm279_vm0, %v724_v35  ;;  %709 = vst.msk [vmem:[#allocation2 + $0x48] sm:$0xff] %vm279_vm0, %v693_v34  ;;  %v698_v38 = vadd.f32 %v963_v36, %v528_v33 }
 0x1d0   : > { %v729_v39 = vld [vmem:[#allocation2 + $0x50] sm:$0xff]  ;;  %v669_v40 = vpop.f32.mrf.mxu1 }
 0x1d1   : > { %745 = vst.msk [vmem:[%s1152_s15 + $0x50] sm:$0xff] %vm279_vm0, %v729_v39  ;;  %714 = vst.msk [vmem:[#allocation2 + $0x70] sm:$0xff] %vm279_vm0, %v698_v38  ;;  %v696_v42 = vadd.f32 %v669_v40, %v526_v37 }
 0x1d2   : > { %v727_v43 = vld [vmem:[#allocation2 + $0x40] sm:$0xff]  ;;  %v964_v44 = vpop.f32.mrf.mxu1 }
 0x1d3   : > { %743 = vst.msk [vmem:[%s1152_s15 + $0x40] sm:$0xff] %vm279_vm0, %v727_v43  ;;  %712 = vst.msk [vmem:[#allocation2 + $0x60] sm:$0xff] %vm279_vm0, %v696_v42  ;;  %v699_v46 = vadd.f32 %v964_v44, %v529_v41 }
 0x1d4   : > { %v730_v47 = vld [vmem:[#allocation2 + $0x58] sm:$0xff]  ;;  %v672_v48 = vpop.f32.mrf.mxu1 }
 0x1d5   : > { %746 = vst.msk [vmem:[%s1152_s15 + $0x58] sm:$0xff] %vm279_vm0, %v730_v47  ;;  %715 = vst.msk [vmem:[#allocation2 + $0x78] sm:$0xff] %vm279_vm0, %v699_v46  ;;  %v697_v49 = vadd.f32 %v672_v48, %v527_v45 }
 0x1d6   : > { %v728_v50 = vld [vmem:[#allocation2 + $0x48] sm:$0xff] }
 0x1d7   : > { %744 = vst.msk [vmem:[%s1152_s15 + $0x48] sm:$0xff] %vm279_vm0, %v728_v50  ;;  %713 = vst.msk [vmem:[#allocation2 + $0x68] sm:$0xff] %vm279_vm0, %v697_v49 }
 0x1d8   : > { %v733_v51 = vld [vmem:[#allocation2 + $0x70] sm:$0xff] }
 0x1d9   : > { %749 = vst.msk [vmem:[%s1152_s15 + $0x70] sm:$0xff] %vm279_vm0, %v733_v51 }
 0x1da   : > { %v731_v52 = vld [vmem:[#allocation2 + $0x60] sm:$0xff] }
 0x1db   : > { %747 = vst.msk [vmem:[%s1152_s15 + $0x60] sm:$0xff] %vm279_vm0, %v731_v52 }
 0x1dc   : > { %v734_v53 = vld [vmem:[#allocation2 + $0x78] sm:$0xff] }
 0x1dd   : > { %750 = vst.msk [vmem:[%s1152_s15 + $0x78] sm:$0xff] %vm279_vm0, %v734_v53 }
 0x1de   : > { %v732_v54 = vld [vmem:[#allocation2 + $0x68] sm:$0xff] }
 0x1df   : > { %748 = vst.msk [vmem:[%s1152_s15 + $0x68] sm:$0xff] %vm279_vm0, %v732_v54 }
 0x1e0 PF: > { %s20_s22 = sadd.s32 1, %s1041_s22   ;;  %s1213_s20 = smov %s1037_s21 }
 0x1e1   : > { %p17_p12 = scmp.ge.s32.totalorder %s20_s22, 4   ;;  %s1214_s21 = smov %s1216_s0 }
 0x1e3   :  { %19 = sbr.rel (!%p17_p12) target bundleno = 17 (0x11), region = 76 }

</bundles_post_ra>
